<compile_context>
chip_gen: v7x
topology: tpu7x:2x2x1
jax: 0.10.0
libtpu: 0.0.40
codegen_flags: <defaults>
</compile_context>

<pallas_src>
import functools

import jax
import jax.numpy as jnp
from jax.experimental import pallas as pl
from jax.experimental.pallas import tpu as pltpu

_LANE = 128


def _bddi_if_scan_kernel(x_ref, w_ref, b_ref, state0_ref,
                         spike_ref, state_ref, *, threshold):
    """One grid step == one timestep of the integrate-and-fire update.

    state_ref has a constant output block index across the time axis, so it
    stays VMEM-resident and acts as the recurrent accumulator; it is
    initialized from state0_ref at t == 0 and only written back to HBM once.
    """
    t = pl.program_id(0)

    @pl.when(t == 0)
    def _():
        state_ref[...] = state0_ref[...]

    # state_pred = clamp(x @ w + b, 0, 1)
    pred = jnp.dot(x_ref[...], w_ref[...], preferred_element_type=jnp.float32)
    pred = jnp.clip(pred + b_ref[...], 0.0, 1.0)

    # integrate-and-fire activation
    c = state_ref[...] + pred
    thr = jnp.float32(threshold)
    spike = jnp.where(c >= thr, thr, jnp.float32(0.0))
    spike_ref[...] = spike
    state_ref[...] = c - spike


def _pad_lanes(a, target):
    pad = target - a.shape[-1]
    if pad == 0:
        return a
    return jnp.pad(a, [(0, 0)] * (a.ndim - 1) + [(0, pad)])


def bddi_if_scan(xs, w, b, state0, threshold=1.0):
    """Apply the bddi_if update over T timesteps in a single pallas_call.

    xs:     [T, B, F_in]  float32
    w:      [F_in, F_out] float32   (PyTorch Linear weight, transposed)
    b:      [F_out]       float32
    state0: [B, F_out]    float32
    Returns (spikes [T, B, F_out], final_state [B, F_out]).
    """
    T, B, F_in = xs.shape
    F_out = w.shape[1]
    # Lane-dense output tiles: pad the feature axis to a multiple of 128 so all
    # stores are unmasked full-lane writes.  Padding lanes stay zero
    # (w = b = state = 0  ->  pred = 0, spike = 0, remainder = 0).
    Fp = max(_LANE, ((F_out + _LANE - 1) // _LANE) * _LANE)

    xs = xs.astype(jnp.float32)
    w_p = _pad_lanes(w.astype(jnp.float32), Fp)
    b_p = _pad_lanes(b.astype(jnp.float32).reshape(1, F_out), Fp)
    s_p = _pad_lanes(state0.astype(jnp.float32), Fp)

    kernel = functools.partial(_bddi_if_scan_kernel, threshold=float(threshold))

    spikes_p, state_p = pl.pallas_call(
        kernel,
        out_shape=(
            jax.ShapeDtypeStruct((T, B, Fp), jnp.float32),
            jax.ShapeDtypeStruct((B, Fp), jnp.float32),
        ),
        grid=(T,),
        in_specs=[
            pl.BlockSpec((None, B, F_in), lambda t: (t, 0, 0)),  # per-step input
            pl.BlockSpec((F_in, Fp), lambda t: (0, 0)),          # weight (VMEM-resident)
            pl.BlockSpec((1, Fp), lambda t: (0, 0)),             # bias   (VMEM-resident)
            pl.BlockSpec((B, Fp), lambda t: (0, 0)),             # initial state
        ],
        out_specs=(
            pl.BlockSpec((None, B, Fp), lambda t: (t, 0, 0)),    # per-step spikes
            pl.BlockSpec((B, Fp), lambda t: (0, 0)),             # resident state acc.
        ),
        # Write the new state in place over the (padded) initial-state buffer.
        input_output_aliases={3: 1},
        compiler_params=pltpu.CompilerParams(
            # Time carries the state -> must stay sequential.  For large B /
            # F_out, add a leading batch/feature grid axis marked "parallel"
            # (v7x megacore) — not needed at these sizes (one (8,128) tile).
            dimension_semantics=("arbitrary",),
        ),
    )(xs, w_p, b_p, s_p)

    return spikes_p[..., :F_out], state_p[:, :F_out]


def bddi_if_forward(x, w, b, state, threshold=1.0):
    """Single-step forward matching the PyTorch module (proj_fn=None)."""
    spikes, new_state = bddi_if_scan(x[None], w, b, state, threshold)
    return spikes[0], new_state


def _reference_scan(xs, w, b, state0, threshold=1.0):
    def step(state, x):
        pred = jnp.clip(x @ w + b[None, :], 0.0, 1.0)
        c = state + pred
        spike = jnp.where(c >= threshold, jnp.float32(threshold), jnp.float32(0.0))
        return c - spike, spike

    final_state, spikes = jax.lax.scan(step, state0, xs)
    return spikes, final_state


if __name__ == "__main__":
    # Small shapes consistent with the module: 4 timesteps, batch=8,
    # in_features=16, out_features=32.
    T, B, F_in, F_out = 4, 8, 16, 32
    threshold = 1.0

    key = jax.random.PRNGKey(0)
    kx, kw, kb, ks = jax.random.split(key, 4)

    bound = 1.0 / (F_in ** 0.5)  # PyTorch-Linear-like uniform init
    xs = jax.random.normal(kx, (T, B, F_in), dtype=jnp.float32)
    w = jax.random.uniform(kw, (F_in, F_out), minval=-bound, maxval=bound,
                           dtype=jnp.float32)
    b = jax.random.uniform(kb, (F_out,), minval=-bound, maxval=bound,
                           dtype=jnp.float32)
    state0 = jax.random.uniform(ks, (B, F_out), minval=0.0, maxval=1.0,
                                dtype=jnp.float32)

    # References first (pure JAX).
    ref_spikes, ref_final = _reference_scan(xs, w, b, state0, threshold)

    # Multi-timestep fused kernel.
    spikes, final_state = bddi_if_scan(xs, w, b, state0, threshold)
    jax.block_until_ready((spikes, final_state))
    assert jnp.allclose(spikes, ref_spikes, atol=1e-5), "scan spike mismatch"
    assert jnp.allclose(final_state, ref_final, atol=1e-5), "scan state mismatch"

    # Single-step forward (the literal nn.Module.forward).
    spike1, state1 = bddi_if_forward(xs[0], w, b, state0, threshold)
    jax.block_until_ready((spike1, state1))
    assert jnp.allclose(spike1, ref_spikes[0], atol=1e-5), "step spike mismatch"
    assert jnp.allclose(state1, ref_spikes[0] * 0 + (ref_spikes[0] != ref_spikes[0]).astype(jnp.float32) + ref_final * 0 + (_reference_scan(xs[:1], w, b, state0, threshold)[1]), atol=1e-5), "step state mismatch"

    print("KERNEL_OK")
</pallas_src>

<mosaic_0001>
module attributes {stable_mosaic.version = 11 : i64} {
  func.func @_bddi_if_scan_kernel(%arg0: i32, %arg1: memref<1x8x16xf32, #tpu.memory_space<vmem>>, %arg2: memref<16x128xf32, #tpu.memory_space<vmem>>, %arg3: memref<1x128xf32, #tpu.memory_space<vmem>>, %arg4: memref<8x128xf32, #tpu.memory_space<vmem>>, %arg5: memref<1x8x128xf32, #tpu.memory_space<vmem>>, %arg6: memref<8x128xf32, #tpu.memory_space<vmem>>) attributes {dimension_semantics = [#tpu.dimension_semantics<arbitrary>], iteration_bounds = array<i64: 4>, scalar_prefetch = 0 : i64, scratch_operands = 0 : i64, tpu.core_type = #tpu.core_type<tc>, window_params = [{transform_indices = @transform_0, window_bounds = array<i64: 1, 8, 16>}, {pipeline_mode = #tpu.pipeline_mode<synchronous>, transform_indices = @transform_1, window_bounds = array<i64: 16, 128>}, {pipeline_mode = #tpu.pipeline_mode<synchronous>, transform_indices = @transform_2, window_bounds = array<i64: 1, 128>}, {pipeline_mode = #tpu.pipeline_mode<synchronous>, transform_indices = @transform_3, window_bounds = array<i64: 8, 128>}, {transform_indices = @transform_4, window_bounds = array<i64: 1, 8, 128>}, {pipeline_mode = #tpu.pipeline_mode<synchronous>, transform_indices = @transform_5, window_bounds = array<i64: 8, 128>}]} {
    %c0_i32 = arith.constant 0 : i32
    %0 = arith.cmpi eq, %arg0, %c0_i32 : i32
    %1 = arith.extui %0 : i1 to i32
    %c0_i32_0 = arith.constant 0 : i32
    %2 = arith.cmpi ne, %1, %c0_i32_0 : i32
    scf.if %2 {
      %c0_19 = arith.constant 0 : index
      %c0_20 = arith.constant 0 : index
      %26 = vector.load %arg4[%c0_19, %c0_20] : memref<8x128xf32, #tpu.memory_space<vmem>>, vector<8x128xf32>
      %c0_21 = arith.constant 0 : index
      %c0_22 = arith.constant 0 : index
      %27 = vector.load %arg6[%c0_21, %c0_22] : memref<8x128xf32, #tpu.memory_space<vmem>>, vector<8x128xf32>
      tpu.vector_store %arg6[%c0_21, %c0_22], %26 {strides = array<i32>} : memref<8x128xf32, #tpu.memory_space<vmem>>, vector<8x128xf32>,
    } else {
    }
    %c0 = arith.constant 0 : index
    %c0_1 = arith.constant 0 : index
    %c0_2 = arith.constant 0 : index
    %3 = vector.load %arg1[%c0, %c0_1, %c0_2] : memref<1x8x16xf32, #tpu.memory_space<vmem>>, vector<1x8x16xf32>
    %4 = vector.shape_cast %3 : vector<1x8x16xf32> to vector<8x16xf32>
    %c0_3 = arith.constant 0 : index
    %c0_4 = arith.constant 0 : index
    %5 = vector.load %arg2[%c0_3, %c0_4] : memref<16x128xf32, #tpu.memory_space<vmem>>, vector<16x128xf32>
    %cst = arith.constant dense<0.000000e+00> : vector<8x128xf32>
    %6 = tpu.matmul %4, %5, %cst {dimension_numbers = #tpu.dot_dimension_numbers<[1], [0], [0], [1], [0, 0, 1, 1], [], []>} : vector<8x16xf32>, vector<16x128xf32>, vector<8x128xf32> -> vector<8x128xf32>
    %c0_5 = arith.constant 0 : index
    %c0_6 = arith.constant 0 : index
    %7 = vector.load %arg3[%c0_5, %c0_6] : memref<1x128xf32, #tpu.memory_space<vmem>>, vector<1x128xf32>
    %8 = vector.broadcast %7 : vector<1x128xf32> to vector<8x128xf32>
    %9 = arith.addf %6, %8 : vector<8x128xf32>
    %cst_7 = arith.constant 0.000000e+00 : f32
    %cst_8 = arith.constant 1.000000e+00 : f32
    %10 = vector.broadcast %cst_7 : f32 to vector<8x128xf32>
    %11 = arith.maximumf %10, %9 : vector<8x128xf32>
    %12 = vector.broadcast %cst_8 : f32 to vector<8x128xf32>
    %13 = arith.minimumf %12, %11 : vector<8x128xf32>
    %c0_9 = arith.constant 0 : index
    %c0_10 = arith.constant 0 : index
    %14 = vector.load %arg6[%c0_9, %c0_10] : memref<8x128xf32, #tpu.memory_space<vmem>>, vector<8x128xf32>
    %15 = arith.addf %14, %13 : vector<8x128xf32>
    %cst_11 = arith.constant 1.000000e+00 : f32
    %16 = vector.broadcast %cst_11 : f32 to vector<8x128xf32>
    %17 = arith.cmpf oge, %15, %16 : vector<8x128xf32>
    %cst_12 = arith.constant 1.000000e+00 : f32
    %cst_13 = arith.constant 0.000000e+00 : f32
    %18 = vector.broadcast %cst_12 : f32 to vector<8x128xf32>
    %19 = vector.broadcast %cst_13 : f32 to vector<8x128xf32>
    %20 = arith.select %17, %18, %19 : vector<8x128xi1>, vector<8x128xf32>
    %c0_14 = arith.constant 0 : index
    %c0_15 = arith.constant 0 : index
    %c0_16 = arith.constant 0 : index
    %21 = vector.load %arg5[%c0_14, %c0_15, %c0_16] : memref<1x8x128xf32, #tpu.memory_space<vmem>>, vector<1x8x128xf32>
    %22 = vector.shape_cast %21 : vector<1x8x128xf32> to vector<8x128xf32>
    %23 = vector.shape_cast %20 : vector<8x128xf32> to vector<1x8x128xf32>
    tpu.vector_store %arg5[%c0_14, %c0_15, %c0_16], %23 {strides = array<i32>} : memref<1x8x128xf32, #tpu.memory_space<vmem>>, vector<1x8x128xf32>,
    %24 = arith.subf %15, %20 : vector<8x128xf32>
    %c0_17 = arith.constant 0 : index
    %c0_18 = arith.constant 0 : index
    %25 = vector.load %arg6[%c0_17, %c0_18] : memref<8x128xf32, #tpu.memory_space<vmem>>, vector<8x128xf32>
    tpu.vector_store %arg6[%c0_17, %c0_18], %24 {strides = array<i32>} : memref<8x128xf32, #tpu.memory_space<vmem>>, vector<8x128xf32>,
    return
  }
  func.func @transform_0(%arg0: i32) -> (i32, i32, i32) {
    %c0_i32 = arith.constant 0 : i32
    %c0_i32_0 = arith.constant 0 : i32
    %c0_i32_1 = arith.constant 0 : i32
    return %arg0, %c0_i32, %c0_i32_0 : i32, i32, i32
  }
  func.func @transform_1(%arg0: i32) -> (i32, i32) {
    %c0_i32 = arith.constant 0 : i32
    %c0_i32_0 = arith.constant 0 : i32
    %c0_i32_1 = arith.constant 0 : i32
    return %c0_i32, %c0_i32_0 : i32, i32
  }
  func.func @transform_2(%arg0: i32) -> (i32, i32) {
    %c0_i32 = arith.constant 0 : i32
    %c0_i32_0 = arith.constant 0 : i32
    %c0_i32_1 = arith.constant 0 : i32
    return %c0_i32, %c0_i32_0 : i32, i32
  }
  func.func @transform_3(%arg0: i32) -> (i32, i32) {
    %c0_i32 = arith.constant 0 : i32
    %c0_i32_0 = arith.constant 0 : i32
    %c0_i32_1 = arith.constant 0 : i32
    return %c0_i32, %c0_i32_0 : i32, i32
  }
  func.func @transform_4(%arg0: i32) -> (i32, i32, i32) {
    %c0_i32 = arith.constant 0 : i32
    %c0_i32_0 = arith.constant 0 : i32
    %c0_i32_1 = arith.constant 0 : i32
    return %arg0, %c0_i32, %c0_i32_0 : i32, i32, i32
  }
  func.func @transform_5(%arg0: i32) -> (i32, i32) {
    %c0_i32 = arith.constant 0 : i32
    %c0_i32_0 = arith.constant 0 : i32
    %c0_i32_1 = arith.constant 0 : i32
    return %c0_i32, %c0_i32_0 : i32, i32
  }
}

</mosaic_0001>

<bundles_post_ra>
// kernel: tpu_custom_call.1
= control target key start
LH: loop header
LB: loop body
LE: loop exit
PB: predicated region body
PF: predicated region fallthrough
CT: control target
= control target key end

     0   :  { %11 = vsyncpa [#allocation3], 0  ;;  %s1007_s0 = inlined_call_operand.hbm [shape: f32[4,8,16], index: 0, kind: input, shape index: {}]   ;;  %s1008_s1 = inlined_call_operand.vmem [shape: f32[16,128], index: 1, kind: input, shape index: {}]   ;;  %s1009_s2 = inlined_call_operand.vmem [shape: f32[1,128], index: 2, kind: input, shape index: {}]   ;;  %s1010_s3 = inlined_call_operand.hbm [shape: f32[8,128], index: 3, kind: input, shape index: {}, may-alias: {3,5}]   ;;  %s1011_s4 = inlined_call_operand.hbm [shape: f32[4,8,128], index: 4, kind: output, shape index: {0}]   ;;  %s1012_s5 = inlined_call_operand.hbm [shape: f32[8,128], index: 5, kind: output, shape index: {1}, may-alias: {3,5}]  }
   0x1   :  { %13 = vsyncpa [#allocation3 + $0x1], 0 }
   0x2   :  { %14 = vsyncpa [#allocation6], 0 }
   0x3   :  { %15 = vsyncpa [#allocation4], 0 }
   0x4   :  { %17 = vsyncpa [#allocation4 + $0x1], 0 }
   0x5   :  { %18 = vsyncpa [#allocation9], 0  ;;  %s763_s18 = smov 0   ;;  %s765_s19 = smov 0  }
   0x6   :  { %s767_s20 = smov 0   ;;  %s769_s21 = smov 0  }
   0x7 LB: > { %s784_s22 = sadd.s32 4294967295, %s724_s21   ;;  %s467_s23 = sadd.s32 4294967294, %s724_s21   ;;  %s724_s21 = sphi %s769_s21, %s1041_s21   ;;  %s720_s20 = sphi %s767_s20, %s1040_s20   ;;  %s716_s19 = sphi %s765_s19, %s1039_s19   ;;  %s712_s18 = sphi %s763_s18, %s1038_s18  }
   0x8   : > { %p44_p0 = scmp.ne.s32.totalorder %s716_s19, %s712_s18  ;;  %p1013_p1 = scmp.eq.s32.totalorder %s784_s22, 0 }
   0x9   : > { %p137_p3 = scmp.eq.s32.totalorder %s467_s23, 3  ;;  %p468_p5 = scmp.ge.s32.totalorder %s724_s21, 1 }
   0xa   : > { %p793_p4 = por %p1013_p1, %p44_p0  ;;  %p165_p7 = scmp.lt.s32.totalorder %s724_s21, 5 }
   0xb   : > { %p798_p6 = por %p137_p3, %p44_p0  ;;  %s726_s27 = smov [#allocation5]  }
   0xc   : > { %s1016_s24 = scalar_select %p793_p4, 1, 0 }
   0xd   : > { %s1017_s25 = scalar_select %p798_p6, 1, 0 }
   0xe   : > { %p804_p9 = pnand %p468_p5, %p165_p7  ;;  %s184_s28 = sshll.u32 %s726_s27, 4  ;;  %s185_s28 = int_to_ptr.vmem [resolvable:$true] %s184_s28 }
   0xf   : > { %s811_s29 = sadd.s32 1, %s724_s21   ;;  %s31_s8 = sadd.s32 1, %s720_s20 }
  0x10   : > { %s1018_s26 = scalar_select %p804_p9, 1, 0 }
  0x11   : > { %p511_p10 = pneg %p804_p9  ;;  %s28_s6 = ssub.s32 %s724_s21, %s811_s29 }
  0x12   : > { %p821_p12 = scmp.eq.s32.totalorder %s28_s6, 0  ;;  %s566_s11 = scalar_lea.hbm %s1010_s3, 128 }
  0x13   : > { %p815_p11 = pnand %p511_p10, %p1013_p1  ;;  %p567_p0 = scmp.ne.s32.totalorder %s1010_s3, %s566_s11 }
  0x14   : > { %s1020_s7 = scalar_select %p821_p12, 1, 0 }
  0x15   : > { %p568_p3 = pneg %p815_p11  ;;  %p573_p10 = scmp.lt.u32.totalorder %s566_s11, %s1010_s3 }
  0x17   : > { %p569_p5 = pnand %p568_p3, %p567_p0 }
  0x19   : > { %p570_p7 = pneg %p569_p5 }
  0x1b   : > { %p575_p8 = pnand %p573_p10, %p570_p7 }
  0x1d   : > { %578 = shalt.err (!%p575_p8)
}
  0x1e   : > { %s579_s16 = scalar_lea.vmem %s185_s28, 128  ;;  %p587_p6 = scmp.lt.s32.totalorder %s185_s28, %s185_s28 }
  0x1f   : > { %p580_p1 = scmp.ne.s32.totalorder %s185_s28, %s579_s16  ;;  %p588_p4 = scmp.lt.s32.totalorder %s579_s16, %s579_s16 }
  0x21   : > { %p582_p2 = pnand %p580_p1, %p568_p3  ;;  %p589_p9 = por %p588_p4, %p587_p6 }
  0x23   : > { %p583_p13 = pneg %p582_p2 }
  0x25   : > { %p590_p12 = pnand %p589_p9, %p583_p13 }
  0x27   : > { %593 = shalt.err (!%p590_p12)
}
  0x28   : > { %514 = dma.hbm_to_vmem [thread:$0]  (!%p815_p11), %s1010_s3, 128, %s185_s28, [#allocation6]  }
  0x29   : > { %p1021_p1 = scmp.ne.s32.totalorder %s1020_s7, 0  ;;  %p39_p2 = scmp.eq.s32.totalorder %s724_s21, 0 }
  0x2a   : > { %p1022_p4 = scmp.ne.s32.totalorder %s720_s20, %s716_s19  ;;  %p1023_p6 = scmp.eq.s32.totalorder %s784_s22, 3 }
  0x2b   : > { %s847_s27 = scalar_select %p1021_p1, %s720_s20, %s31_s8  }
  0x2c   : > { %p855_p8 = por %p1023_p6, %p1022_p4  ;;  %p524_p9 = scmp.lt.s32.totalorder %s724_s21, 4 }
  0x2d   : > { %s195_s6 = sand.u32 1, %s720_s20   ;;  %p1025_p12 = pmov %p1022_p4 }
  0x2e   : > { %s471_s9 = sshll.u32 %s195_s6, 3  ;;  %s472_s10 = sshll.u32 %s724_s21, 7 }
  0x2f   : > { %p40_p13 = por %p39_p2, %p1025_p12  ;;  %s868_s28 = scalar_lea.hbm %s1007_s0, %s472_s10 }
  0x30   : > { %s199_s7 = scalar_lea.vmem [#allocation2], %s471_s9  ;;  %s196_s14 = scalar_lea.sflag [#allocation3], %s195_s6 }
  0x31   : > { %s206_s8 = sshll.u32 %s199_s7, 4  ;;  %p870_p11 = pnand %p524_p9, %p40_p13  ;;  %s874_s8 = int_to_ptr.vmem [resolvable:$true] %s206_s8 }
  0x32   : > { %s594_s15 = scalar_lea.hbm %s868_s28, 128  ;;  %s599_s23 = scalar_lea.hbm %s1007_s0, 512 }
  0x33   : > { %p595_p0 = scmp.ne.s32.totalorder %s868_s28, %s594_s15  ;;  %p596_p3 = pneg %p870_p11 }
  0x34   : > { %p600_p10 = scmp.lt.u32.totalorder %s868_s28, %s1007_s0  ;;  %p601_p1 = scmp.lt.u32.totalorder %s599_s23, %s594_s15 }
  0x35   : > { %p597_p5 = pnand %p596_p3, %p595_p0  ;;  %p603_p4 = scmp.lt.u32.totalorder %s594_s15, %s868_s28 }
  0x36   : > { %p602_p2 = por %p601_p1, %p600_p10 }
  0x37   : > { %p598_p7 = pneg %p597_p5 }
  0x38   : > { %p604_p6 = por %p603_p4, %p602_p2 }
  0x3a   : > { %p605_p9 = pnand %p604_p6, %p598_p7 }
  0x3c   : > { %608 = shalt.err (!%p605_p9)
}
  0x3d   : > { %s609_s6 = scalar_lea.vmem %s874_s8, 128  ;;  %s727_s11 = smov [#allocation2]  }
  0x3e   : > { %p610_p12 = scmp.ne.s32.totalorder %s874_s8, %s609_s6  ;;  %s614_s12 = sshll.u32 %s727_s11, 4  ;;  %s615_s12 = int_to_ptr.vmem [resolvable:$false] %s614_s12 }
  0x3f   : > { %s616_s7 = scalar_lea.vmem %s615_s12, 256  ;;  %p617_p5 = scmp.lt.s32.totalorder %s874_s8, %s615_s12 }
  0x40   : > { %p612_p13 = pnand %p610_p12, %p596_p3  ;;  %p618_p10 = scmp.lt.s32.totalorder %s616_s7, %s609_s6 }
  0x42   : > { %p613_p0 = pneg %p612_p13  ;;  %p619_p1 = por %p618_p10, %p617_p5 }
  0x44   : > { %p620_p2 = pnand %p619_p1, %p613_p0 }
  0x46   : > { %623 = shalt.err (!%p620_p2)
}
  0x47   : > { %518 = dma.hbm_to_vmem [thread:$0]  (!%p870_p11), %s868_s28, 128, %s874_s8, %s196_s14  }
  0x48   : > { %p1027_p7 = scmp.ne.s32.totalorder %s1018_s26, 0 }
  0x49   : > { %s904_s15 = sand.u32 (!%p1027_p7), 1, %s716_s19   ;;  %p1028_p3 = scmp.ne.s32.totalorder (!%p1027_p7), %s1016_s24, 0 }
  0x4a   : > { %215 = sbr.rel (%p1027_p7) target bundleno = 363 (0x16b), region = 36  ;;  %s474_s16 = sshll.u32 (!%p1027_p7), %s904_s15, 3 }
  0x4b   : > { %s218_s17 = scalar_lea.sflag (!%p1027_p7), [#allocation3], %s904_s15  ;;  %s221_s23 = scalar_lea.vmem (!%p1027_p7), [#allocation2], %s474_s16 }
  0x51   : > { %695 = dma.done.wait (%p1028_p3), %s218_s17, 128  }
  0x52   : > { %697 = vsyncadd (%p1028_p3), %s218_s17, 4294967168  ;;  %p1029_p4 = scmp.eq.s32.totalorder %s784_s22, 0 }
  0x54   : > { %699 = dma.done.wait (%p1029_p4), [#allocation6], 128   ;;  %p1030_p11 = pmov %p1029_p4 }
  0x55   : > { %s916_s26 = scalar_lea.vmem [#allocation7], %s474_s16  ;;  %p1031_p6 = scmp.ne.s32.totalorder %s784_s22, 0 }
  0x56   : > { %701 = vsyncadd (%p1030_p11), [#allocation6], 4294967168  ;;  %v256_v0 = vld [vmem:[#allocation5] sm:$0xff] (!%p1031_p6) }
  0x57   : > { %255 = sbr.rel (%p1031_p6) target bundleno = 94 (0x5e), region = 48  ;;  %257 = vst [vmem:[#allocation8] sm:$0xff] (!%p1031_p6), %v256_v0 }
  0x5e PF: > { %v259_v1 = vld [vmem:[%s1008_s1] sm:$0xff]  ;;  %v260_v2 = vld [vmem:[%s1008_s1 + $0x8] sm:$0xff]  ;;  %v728_v3 = vmov 0.0|0.0   ;;  %vm729_vm0 = vmmov 0   ;;  %v730_v5 = vmov 0.0   ;;  %v258_v6 = vld [vmem:[%s221_s23] sm:$0xff] }
  0x5f   : > { %496 = vmatprep.subr.bf16.mxu0 %v728_v3  ;;  %v497_v4 = vpack.c.bf16 %v260_v2, %v259_v1  ;;  %493 = vmatprep.mubr.msk.f32.mxu0 %vm729_vm0, %v730_v5  ;;  %vm268_vm1 = vcmask 130048   ;;  %v478_v7 = vld [vmem:[%s1009_s2] ss:$0 sm:$0xff]  ;;  %v344_v12 = vld [vmem:[#allocation8] sm:$0xff]  ;;  %s481_s10 = sshll.u32 %s784_s22, 7  ;;  %s365_s6 = sshll.u32 %s916_s26, 4  ;;  %s936_s6 = int_to_ptr.vmem [resolvable:$true] %s365_s6 }
  0x60   : > { %s731_s11 = smov [#allocation8]   ;;  %s934_s17 = scalar_lea.hbm %s1011_s4, %s481_s10 }
  0x61   : > { %498 = vmatpush3.bf16.msra.mxu0 %v497_v4  ;;  %s376_s12 = sshll.u32 %s731_s11, 4  ;;  %s352_s23 = scalar_lea.sflag [#allocation4], %s904_s15  ;;  %s939_s12 = int_to_ptr.vmem [resolvable:$true] %s376_s12 }
  0x62   : > { %s624_s28 = scalar_lea.vmem %s936_s6, 128  ;;  %s732_s8 = smov [#allocation7]  }
  0x63   : > { %p625_p9 = scmp.ne.s32.totalorder %s936_s6, %s624_s28  ;;  %s628_s24 = sshll.u32 %s732_s8, 4  ;;  %s629_s24 = int_to_ptr.vmem [resolvable:$false] %s628_s24 }
  0x64   : > { %494 = vmatmul.mubr.msk.f32.vlgmr.msra.gmra.mrb[0].mxu0 %vm268_vm1, %v258_v6  ;;  %s630_s13 = scalar_lea.vmem %s629_s24, 256  ;;  %p631_p0 = scmp.lt.s32.totalorder %s936_s6, %s629_s24 }
  0x65   : > { %p626_p12 = pnand %p625_p9, %p855_p8  ;;  %p632_p5 = scmp.lt.s32.totalorder %s630_s13, %s624_s28 }
  0x67   : > { %p627_p13 = pneg %p626_p12  ;;  %p633_p10 = por %p632_p5, %p631_p0 }
  0x69   : > { %p634_p1 = pnand %p633_p10, %p627_p13 }
 0x137   : > { %v338_v8 = vpop.f32.mrb[0].mxu0 }
 0x138   : > { %v339_v9 = vadd.f32 %v478_v7, %v338_v8  ;;  %v495_v10 = vpop.f32.mrb[1].mxu0 }
 0x13a   : > { %v342_v11 = vmax.f32 %v339_v9, 0.0 }
 0x13c   : > { %v343_v13 = vmin.f32 %v342_v11, 1.0 }
 0x13e   : > { %v345_v14 = vadd.f32 %v344_v12, %v343_v13 }
 0x140   : > { %vm346_vm2 = vcmp.ge.f32.partialorder %v345_v14, 1.0 }
 0x141   : > { %v347_v15 = vsel %vm346_vm2, 1.0, %v730_v5 }
 0x142   : > { %348 = vst [vmem:[%s916_s26] sm:$0xff] %v347_v15  ;;  %v349_v16 = vsub.f32 %v345_v14, %v347_v15 }
 0x143   : > { %637 = shalt.err (!%p634_p1)
}
 0x144   : > { %s638_s15 = scalar_lea.hbm %s934_s17, 128  ;;  %s642_s9 = scalar_lea.hbm %s1011_s4, 512 }
 0x145   : > { %p639_p2 = scmp.ne.s32.totalorder %s934_s17, %s638_s15  ;;  %p643_p4 = scmp.lt.u32.totalorder %s934_s17, %s1011_s4 }
 0x146   : > { %p644_p11 = scmp.lt.u32.totalorder %s642_s9, %s638_s15  ;;  %p646_p9 = scmp.lt.u32.totalorder %s638_s15, %s934_s17 }
 0x147   : > { %p640_p7 = pnand %p639_p2, %p855_p8 }
 0x148   : > { %p645_p6 = por %p644_p11, %p643_p4 }
 0x149   : > { %p641_p3 = pneg %p640_p7 }
 0x14a   : > { %p647_p12 = por %p646_p9, %p645_p6 }
 0x14c   : > { %p648_p13 = pnand %p647_p12, %p641_p3 }
 0x14e   : > { %651 = shalt.err (!%p648_p13)
}
 0x14f   : > { %505 = dma.vmem_to_hbm [thread:$0]  (%p855_p8), %s936_s6, 128, %s934_s17, %s352_s23   ;;  %350 = vst [vmem:[#allocation8] sm:$0xff] %v349_v16 }
 0x150   : > { %s652_s7 = scalar_lea.vmem %s939_s12, 128  ;;  %p1032_p5 = scmp.eq.s32.totalorder %s784_s22, 3 }
 0x151   : > { %p653_p0 = scmp.ne.s32.totalorder %s939_s12, %s652_s7  ;;  %p659_p2 = scmp.lt.s32.totalorder %s939_s12, %s939_s12 }
 0x152   : > { %p660_p7 = scmp.lt.s32.totalorder %s652_s7, %s652_s7 }
 0x153   : > { %p654_p10 = pnand %p653_p0, %p1032_p5 }
 0x154   : > { %p661_p3 = por %p660_p7, %p659_p2 }
 0x155   : > { %p655_p1 = pneg %p654_p10 }
 0x157   : > { %p662_p4 = pnand %p661_p3, %p655_p1 }
 0x159   : > { %665 = shalt.err (!%p662_p4)
}
 0x15a   : > { %s666_s28 = scalar_lea.hbm %s1012_s5, 128  ;;  %p1033_p11 = pmov %p1032_p5 }
 0x15b   : > { %p667_p8 = scmp.ne.s32.totalorder %s1012_s5, %s666_s28  ;;  %p672_p12 = scmp.lt.u32.totalorder %s666_s28, %s1012_s5 }
 0x15d   : > { %p668_p6 = pnand %p667_p8, %p1033_p11 }
 0x15f   : > { %p669_p9 = pneg %p668_p6 }
 0x161   : > { %p674_p13 = pnand %p672_p12, %p669_p9 }
 0x163   : > { %677 = shalt.err (!%p674_p13)
}
 0x164   : > { %p1034_p0 = pmov %p1032_p5 }
 0x166   : > { %507 = dma.vmem_to_hbm [thread:$0]  (%p1034_p0), %s939_s12, 128, %s1012_s5, [#allocation9]  }
 0x167   : > { %p1035_p5 = pmov %p1034_p0 }
 0x168   : > { %p1036_p10 = pmov %p1034_p0 }
 0x169   : > { %703 = dma.done.wait (%p1035_p5), [#allocation9], 128  }
 0x16a   : > { %705 = vsyncadd (%p1036_p10), [#allocation9], 4294967168 }
 0x16b PF: > { %p528_p1 = scmp.ge.s32.totalorder %s724_s21, 2  ;;  %s392_s15 = sand.u32 1, %s712_s18  }
 0x16c   : > { %p1037_p2 = scmp.ne.s32.totalorder %s1017_s25, 0  ;;  %s393_s26 = scalar_lea.sflag [#allocation4], %s392_s15 }
 0x16e   : > { %p520_p7 = pnand %p528_p1, %p1037_p2 }
 0x170   : > { %707 = dma.done.wait (!%p520_p7), %s393_s26, 128  }
 0x171   : > { %709 = vsyncadd (!%p520_p7), %s393_s26, 4294967168  ;;  %p21_p3 = scmp.ge.s32.totalorder %s811_s29, 6   ;;  %s1038_s18 = smov %s716_s19 }
 0x172   : > { %s1039_s19 = smov %s720_s20  ;;  %s1040_s20 = smov %s847_s27 }
 0x173   : > { %s1041_s21 = smov %s811_s29  ;;  %23 = sbr.rel (!%p21_p3) target bundleno = 7 (0x7), region = 97 }
 0x17a   :  { %398 = vsyncpa [#allocation3], 1 }
 0x17b   :  { %400 = vsyncpa [#allocation3 + $0x1], 1 }
 0x17c   :  { %401 = vsyncpa [#allocation6], 1 }
 0x17d   :  { %402 = vsyncpa [#allocation4], 1 }
 0x17e   :  { %404 = vsyncpa [#allocation4 + $0x1], 1 }
 0x17f   :  { %405 = vsyncpa [#allocation9], 1 }

</bundles_post_ra>
